<compile_context>
chip_gen: v7x
topology: tpu7x:2x2x1
jax: 0.10.0
libtpu: 0.0.40
codegen_flags: <defaults>
</compile_context>

<pallas_src>
import jax
import jax.numpy as jnp
from jax.experimental import pallas as pl
from jax.experimental.pallas import tpu as pltpu

HIDDEN = 200      # logical hidden size of the PyTorch module
HIDDEN_PAD = 256  # padded to a multiple of 128 -> lane-dense MXU passes
OUT_DIM = 2       # logical output size
OUT_PAD = 128     # lane-dense output slab; wrapper slices [:, :OUT_DIM]
BLOCK_M = 128     # batch rows per grid step (multiple of 8; tiny in VMEM,
                  # safe under v7x's 64 MiB budget as well as v5e/v6e)


def mlp_kernel(x_ref, w1_ref, b1_ref, w2_ref, b2_ref, w3_ref, b3_ref, o_ref):
    x = x_ref[...]  # bf16 (BLOCK_M, F)

    # fc1 + ReLU: bf16 matmul, f32 accumulate, bias/ReLU on the f32 accumulator.
    h1 = jnp.dot(x, w1_ref[...], preferred_element_type=jnp.float32)
    h1 = jnp.maximum(h1 + b1_ref[...], 0.0)

    # fc2 + ReLU
    h2 = jnp.dot(h1.astype(jnp.bfloat16), w2_ref[...],
                 preferred_element_type=jnp.float32)
    h2 = jnp.maximum(h2 + b2_ref[...], 0.0)

    # fc3 (no activation); lane-padded columns carry zero weights/bias.
    out = jnp.dot(h2.astype(jnp.bfloat16), w3_ref[...],
                  preferred_element_type=jnp.float32)
    o_ref[...] = (out + b3_ref[...]).astype(o_ref.dtype)


def net_forward(x, padded_params, *, block_m=BLOCK_M):
    """x: f32/bf16 [B, num_features]; returns f32 [B, OUT_DIM]."""
    w1, b1, w2, b2, w3, b3 = padded_params
    B, F = x.shape
    n_blocks = pl.cdiv(B, block_m)
    Bp = n_blocks * block_m

    xb = x.astype(jnp.bfloat16)
    if Bp != B:
        xb = jnp.pad(xb, ((0, Bp - B), (0, 0)))  # zero rows, sliced off below

    def resident(arr):  # full block, same tile every grid step -> stays in VMEM
        return pl.BlockSpec(arr.shape, lambda i: (0, 0))

    out = pl.pallas_call(
        mlp_kernel,
        out_shape=jax.ShapeDtypeStruct((Bp, OUT_PAD), jnp.float32),
        grid_spec=pl.GridSpec(
            grid=(n_blocks,),
            in_specs=[
                pl.BlockSpec((block_m, F), lambda i: (i, 0)),
                resident(w1), resident(b1),
                resident(w2), resident(b2),
                resident(w3), resident(b3),
            ],
            out_specs=pl.BlockSpec((block_m, OUT_PAD), lambda i: (i, 0)),
        ),
        compiler_params=pltpu.CompilerParams(
            dimension_semantics=("parallel",),
        ),
    )(xb, w1, b1, w2, b2, w3, b3)

    return out[:B, :OUT_DIM]


def init_params(key, num_features, hidden=HIDDEN, out_dim=OUT_DIM):
    """Deterministic init mirroring nn.Linear's U(-1/sqrt(fan_in), ...), [in, out] layout."""
    def linear(k, fan_in, fan_out):
        kw, kb = jax.random.split(k)
        bound = 1.0 / jnp.sqrt(fan_in)
        w = jax.random.uniform(kw, (fan_in, fan_out), jnp.float32, -bound, bound)
        b = jax.random.uniform(kb, (1, fan_out), jnp.float32, -bound, bound)
        return w, b

    k1, k2, k3 = jax.random.split(key, 3)
    w1, b1 = linear(k1, num_features, hidden)
    w2, b2 = linear(k2, hidden, hidden)
    w3, b3 = linear(k3, hidden, out_dim)
    return (w1, b1, w2, b2, w3, b3)


def prepare_params(params, hidden_pad=HIDDEN_PAD, out_pad=OUT_PAD):
    """Zero-pad hidden->hidden_pad and out->out_pad; weights to bf16, biases f32.

    Zero padding keeps numerics identical: padded hidden lanes see bias 0,
    ReLU keeps them 0, and w3's padded rows are 0 so nothing leaks into fc3.
    """
    w1, b1, w2, b2, w3, b3 = params
    F, H = w1.shape
    O = w3.shape[1]

    w1p = jnp.zeros((F, hidden_pad), jnp.float32).at[:, :H].set(w1).astype(jnp.bfloat16)
    b1p = jnp.zeros((1, hidden_pad), jnp.float32).at[:, :H].set(b1)
    w2p = jnp.zeros((hidden_pad, hidden_pad), jnp.float32).at[:H, :H].set(w2).astype(jnp.bfloat16)
    b2p = jnp.zeros((1, hidden_pad), jnp.float32).at[:, :H].set(b2)
    w3p = jnp.zeros((hidden_pad, out_pad), jnp.float32).at[:H, :O].set(w3).astype(jnp.bfloat16)
    b3p = jnp.zeros((1, out_pad), jnp.float32).at[:, :O].set(b3)
    return (w1p, b1p, w2p, b2p, w3p, b3p)


if __name__ == "__main__":
    num_features = 32
    batch = 8

    key = jax.random.PRNGKey(0)
    kx, kp = jax.random.split(key)

    x = jax.random.normal(kx, (batch, num_features), jnp.float32)
    raw_params = init_params(kp, num_features)
    params = prepare_params(raw_params)

    out = net_forward(x, params)
    jax.block_until_ready(out)

    # Pure-JAX reference at matching precision (bf16 operands, f32 accumulate).
    w1p, b1p, w2p, b2p, w3p, b3p = params
    xb = x.astype(jnp.bfloat16)
    h1 = jnp.maximum(jnp.dot(xb, w1p, preferred_element_type=jnp.float32) + b1p, 0.0)
    h2 = jnp.maximum(jnp.dot(h1.astype(jnp.bfloat16), w2p,
                             preferred_element_type=jnp.float32) + b2p, 0.0)
    ref = (jnp.dot(h2.astype(jnp.bfloat16), w3p,
                   preferred_element_type=jnp.float32) + b3p)[:, :OUT_DIM]

    assert out.shape == (batch, OUT_DIM)
    assert jnp.allclose(out, ref, atol=2e-3, rtol=2e-3)

    print("KERNEL_OK")
</pallas_src>

<mosaic_0001>
module attributes {stable_mosaic.version = 11 : i64} {
  func.func @mlp_kernel(%arg0: i32, %arg1: memref<128x32xbf16, #tpu.memory_space<vmem>>, %arg2: memref<32x256xbf16, #tpu.memory_space<vmem>>, %arg3: memref<1x256xf32, #tpu.memory_space<vmem>>, %arg4: memref<256x256xbf16, #tpu.memory_space<vmem>>, %arg5: memref<1x256xf32, #tpu.memory_space<vmem>>, %arg6: memref<256x128xbf16, #tpu.memory_space<vmem>>, %arg7: memref<1x128xf32, #tpu.memory_space<vmem>>, %arg8: memref<128x128xf32, #tpu.memory_space<vmem>>) attributes {dimension_semantics = [#tpu.dimension_semantics<parallel>], iteration_bounds = array<i64: 1>, scalar_prefetch = 0 : i64, scratch_operands = 0 : i64, tpu.core_type = #tpu.core_type<tc>, window_params = [{transform_indices = @transform_0, window_bounds = array<i64: 128, 32>}, {pipeline_mode = #tpu.pipeline_mode<synchronous>, transform_indices = @transform_1, window_bounds = array<i64: 32, 256>}, {pipeline_mode = #tpu.pipeline_mode<synchronous>, transform_indices = @transform_2, window_bounds = array<i64: 1, 256>}, {pipeline_mode = #tpu.pipeline_mode<synchronous>, transform_indices = @transform_3, window_bounds = array<i64: 256, 256>}, {pipeline_mode = #tpu.pipeline_mode<synchronous>, transform_indices = @transform_4, window_bounds = array<i64: 1, 256>}, {pipeline_mode = #tpu.pipeline_mode<synchronous>, transform_indices = @transform_5, window_bounds = array<i64: 256, 128>}, {pipeline_mode = #tpu.pipeline_mode<synchronous>, transform_indices = @transform_6, window_bounds = array<i64: 1, 128>}, {transform_indices = @transform_7, window_bounds = array<i64: 128, 128>}]} {
    %c0 = arith.constant 0 : index
    %c0_0 = arith.constant 0 : index
    %0 = vector.load %arg1[%c0, %c0_0] : memref<128x32xbf16, #tpu.memory_space<vmem>>, vector<128x32xbf16>
    %c0_1 = arith.constant 0 : index
    %c0_2 = arith.constant 0 : index
    %1 = vector.load %arg2[%c0_1, %c0_2] : memref<32x256xbf16, #tpu.memory_space<vmem>>, vector<32x256xbf16>
    %cst = arith.constant dense<0.000000e+00> : vector<128x256xf32>
    %2 = tpu.matmul %0, %1, %cst {dimension_numbers = #tpu.dot_dimension_numbers<[1], [0], [0], [1], [0, 0, 1, 1], [], []>} : vector<128x32xbf16>, vector<32x256xbf16>, vector<128x256xf32> -> vector<128x256xf32>
    %c0_3 = arith.constant 0 : index
    %c0_4 = arith.constant 0 : index
    %3 = vector.load %arg3[%c0_3, %c0_4] : memref<1x256xf32, #tpu.memory_space<vmem>>, vector<1x256xf32>
    %4 = vector.broadcast %3 : vector<1x256xf32> to vector<128x256xf32>
    %5 = arith.addf %2, %4 : vector<128x256xf32>
    %cst_5 = arith.constant 0.000000e+00 : f32
    %6 = vector.broadcast %cst_5 : f32 to vector<128x256xf32>
    %7 = arith.maximumf %5, %6 : vector<128x256xf32>
    %8 = arith.truncf %7 : vector<128x256xf32> to vector<128x256xbf16>
    %c0_6 = arith.constant 0 : index
    %c0_7 = arith.constant 0 : index
    %9 = vector.load %arg4[%c0_6, %c0_7] : memref<256x256xbf16, #tpu.memory_space<vmem>>, vector<256x256xbf16>
    %cst_8 = arith.constant dense<0.000000e+00> : vector<128x256xf32>
    %10 = tpu.matmul %8, %9, %cst_8 {dimension_numbers = #tpu.dot_dimension_numbers<[1], [0], [0], [1], [0, 0, 1, 1], [], []>} : vector<128x256xbf16>, vector<256x256xbf16>, vector<128x256xf32> -> vector<128x256xf32>
    %c0_9 = arith.constant 0 : index
    %c0_10 = arith.constant 0 : index
    %11 = vector.load %arg5[%c0_9, %c0_10] : memref<1x256xf32, #tpu.memory_space<vmem>>, vector<1x256xf32>
    %12 = vector.broadcast %11 : vector<1x256xf32> to vector<128x256xf32>
    %13 = arith.addf %10, %12 : vector<128x256xf32>
    %cst_11 = arith.constant 0.000000e+00 : f32
    %14 = vector.broadcast %cst_11 : f32 to vector<128x256xf32>
    %15 = arith.maximumf %13, %14 : vector<128x256xf32>
    %16 = arith.truncf %15 : vector<128x256xf32> to vector<128x256xbf16>
    %c0_12 = arith.constant 0 : index
    %c0_13 = arith.constant 0 : index
    %17 = vector.load %arg6[%c0_12, %c0_13] : memref<256x128xbf16, #tpu.memory_space<vmem>>, vector<256x128xbf16>
    %cst_14 = arith.constant dense<0.000000e+00> : vector<128x128xf32>
    %18 = tpu.matmul %16, %17, %cst_14 {dimension_numbers = #tpu.dot_dimension_numbers<[1], [0], [0], [1], [0, 0, 1, 1], [], []>} : vector<128x256xbf16>, vector<256x128xbf16>, vector<128x128xf32> -> vector<128x128xf32>
    %c0_15 = arith.constant 0 : index
    %c0_16 = arith.constant 0 : index
    %19 = vector.load %arg7[%c0_15, %c0_16] : memref<1x128xf32, #tpu.memory_space<vmem>>, vector<1x128xf32>
    %20 = vector.broadcast %19 : vector<1x128xf32> to vector<128x128xf32>
    %21 = arith.addf %18, %20 : vector<128x128xf32>
    %c0_17 = arith.constant 0 : index
    %c0_18 = arith.constant 0 : index
    %22 = vector.load %arg8[%c0_17, %c0_18] : memref<128x128xf32, #tpu.memory_space<vmem>>, vector<128x128xf32>
    tpu.vector_store %arg8[%c0_17, %c0_18], %21 {strides = array<i32>} : memref<128x128xf32, #tpu.memory_space<vmem>>, vector<128x128xf32>,
    return
  }
  func.func @transform_0(%arg0: i32) -> (i32, i32) {
    %c0_i32 = arith.constant 0 : i32
    %c0_i32_0 = arith.constant 0 : i32
    return %arg0, %c0_i32 : i32, i32
  }
  func.func @transform_1(%arg0: i32) -> (i32, i32) {
    %c0_i32 = arith.constant 0 : i32
    %c0_i32_0 = arith.constant 0 : i32
    %c0_i32_1 = arith.constant 0 : i32
    return %c0_i32, %c0_i32_0 : i32, i32
  }
  func.func @transform_2(%arg0: i32) -> (i32, i32) {
    %c0_i32 = arith.constant 0 : i32
    %c0_i32_0 = arith.constant 0 : i32
    %c0_i32_1 = arith.constant 0 : i32
    return %c0_i32, %c0_i32_0 : i32, i32
  }
  func.func @transform_3(%arg0: i32) -> (i32, i32) {
    %c0_i32 = arith.constant 0 : i32
    %c0_i32_0 = arith.constant 0 : i32
    %c0_i32_1 = arith.constant 0 : i32
    return %c0_i32, %c0_i32_0 : i32, i32
  }
  func.func @transform_4(%arg0: i32) -> (i32, i32) {
    %c0_i32 = arith.constant 0 : i32
    %c0_i32_0 = arith.constant 0 : i32
    %c0_i32_1 = arith.constant 0 : i32
    return %c0_i32, %c0_i32_0 : i32, i32
  }
  func.func @transform_5(%arg0: i32) -> (i32, i32) {
    %c0_i32 = arith.constant 0 : i32
    %c0_i32_0 = arith.constant 0 : i32
    %c0_i32_1 = arith.constant 0 : i32
    return %c0_i32, %c0_i32_0 : i32, i32
  }
  func.func @transform_6(%arg0: i32) -> (i32, i32) {
    %c0_i32 = arith.constant 0 : i32
    %c0_i32_0 = arith.constant 0 : i32
    %c0_i32_1 = arith.constant 0 : i32
    return %c0_i32, %c0_i32_0 : i32, i32
  }
  func.func @transform_7(%arg0: i32) -> (i32, i32) {
    %c0_i32 = arith.constant 0 : i32
    %c0_i32_0 = arith.constant 0 : i32
    return %arg0, %c0_i32 : i32, i32
  }
}

</mosaic_0001>

<bundles_post_ra>
// kernel: tpu_custom_call.1
= control target key start
LH: loop header
LB: loop body
LE: loop exit
PB: predicated region body
PF: predicated region fallthrough
CT: control target
= control target key end

     0   :  { %12 = vsyncpa [#allocation3], 0  ;;  %s1509_s0 = inlined_call_operand.vmem [shape: bf16[128,32], index: 0, kind: input, shape index: {}]   ;;  %s1510_s1 = inlined_call_operand.vmem [shape: bf16[32,256], index: 1, kind: input, shape index: {}]   ;;  %s1511_s2 = inlined_call_operand.vmem [shape: f32[1,256], index: 2, kind: input, shape index: {}]   ;;  %s1512_s3 = inlined_call_operand.hbm [shape: bf16[256,256], index: 3, kind: input, shape index: {}]   ;;  %s1513_s4 = inlined_call_operand.vmem [shape: f32[1,256], index: 4, kind: input, shape index: {}]   ;;  %s1514_s5 = inlined_call_operand.hbm [shape: bf16[256,128], index: 5, kind: input, shape index: {}]   ;;  %s1515_s6 = inlined_call_operand.vmem [shape: f32[1,128], index: 6, kind: input, shape index: {}]   ;;  %s1516_s7 = inlined_call_operand.hbm [shape: f32[128,128], index: 7, kind: output, shape index: {}]  }
   0x1   :  { %13 = vsyncpa [#allocation6], 0 }
   0x2   :  { %14 = vsyncpa [#allocation4], 0  ;;  %s1256_s24 = smov [#allocation2]   ;;  %s1184_s28 = scalar_lea.hbm %s1512_s3, 4096 }
   0x3   :  { %s26_s25 = sshll.u32 %s1256_s24, 4  ;;  %p1185_p0 = scmp.ne.s32.totalorder %s1512_s3, %s1184_s28  ;;  %s27_s25 = int_to_ptr.vmem [resolvable:$true] %s26_s25 }
   0x4   :  { %p1188_p1 = scmp.lt.u32.totalorder %s1184_s28, %s1512_s3 }
   0x6   :  { %p1190_p2 = pnand %p1188_p1, %p1185_p0 }
   0x8   :  { %1193 = shalt.err (!%p1190_p2)
}
   0x9   :  { %s1194_s10 = scalar_lea.vmem %s27_s25, 4096  ;;  %p1199_p4 = scmp.lt.s32.totalorder %s27_s25, %s27_s25 }
   0xa   :  { %p1195_p3 = scmp.ne.s32.totalorder %s27_s25, %s1194_s10  ;;  %p1200_p5 = scmp.lt.s32.totalorder %s1194_s10, %s1194_s10 }
   0xc   :  { %p1201_p6 = por %p1200_p5, %p1199_p4 }
   0xe   :  { %p1202_p7 = pnand %p1201_p6, %p1195_p3 }
  0x10   :  { %1205 = shalt.err (!%p1202_p7)
}
  0x11   :  { %s1257_s11 = smov 128   ;;  %s1258_s12 = smov 8  }
  0x12   :  { %32 = dma.hbm_to_vmem [thread:$0]  %s1512_s3, 4096, %s27_s25, [#allocation3], %s1257_s11, %s1257_s11, %s1258_s12  }
  0x13   :  { %s1259_s15 = smov [#allocation5]   ;;  %s1206_s19 = scalar_lea.hbm %s1514_s5, 2048 }
  0x14   :  { %s40_s16 = sshll.u32 %s1259_s15, 4  ;;  %p1207_p8 = scmp.ne.s32.totalorder %s1514_s5, %s1206_s19  ;;  %s41_s16 = int_to_ptr.vmem [resolvable:$true] %s40_s16 }
  0x15   :  { %p1210_p9 = scmp.lt.u32.totalorder %s1206_s19, %s1514_s5 }
  0x17   :  { %p1212_p10 = pnand %p1210_p9, %p1207_p8 }
  0x19   :  { %1215 = shalt.err (!%p1212_p10)
}
  0x1a   :  { %s1216_s24 = scalar_lea.vmem %s41_s16, 2048  ;;  %p1221_p12 = scmp.lt.s32.totalorder %s41_s16, %s41_s16 }
  0x1b   :  { %p1217_p11 = scmp.ne.s32.totalorder %s41_s16, %s1216_s24  ;;  %p1222_p13 = scmp.lt.s32.totalorder %s1216_s24, %s1216_s24 }
  0x1d   :  { %p1223_p0 = por %p1222_p13, %p1221_p12 }
  0x1f   :  { %p1224_p1 = pnand %p1223_p0, %p1217_p11 }
  0x21   :  { %1227 = shalt.err (!%p1224_p1)
}
  0x22   :  { %s1260_s3 = smov 64   ;;  %s1261_s25 = smov 4  }
  0x23   :  { %46 = dma.hbm_to_vmem [thread:$0]  %s1514_s5, 2048, %s41_s16, [#allocation6], %s1260_s3, %s1260_s3, %s1261_s25  }
  0x24   :  { %1250 = dma.done.wait [#allocation3], 4096  }
  0x25   :  { %1251 = vsyncadd [#allocation3], 4294963200 }
  0x26   :  { %1252 = dma.done.wait [#allocation6], 2048  }
  0x27   :  { %1253 = vsyncadd [#allocation6], 4294965248  ;;  %v1262_v0 = vmov 0   ;;  %v1106_v1 = vld [vmem:[%s1510_s1 + $0x4] ss:$8 sps:$4 sm:$0xff]   ;;  %vm148_vm0 = vcmask 261120   ;;  %v78_v59 = vlaneseq }
  0x28   :  { %205 = vmatprep.mubr.bf16.mxu0 %v1262_v0  ;;  %v1108_v2 = vld [vmem:[%s1510_s1] ss:$8 sps:$4 sm:$0xff]   ;;  %173 = vmatprep.subr.bf16.mxu0 %v1106_v1  ;;  %v1109_v3 = vld [vmem:[%s1510_s1 + $0x14] ss:$8 sps:$4 sm:$0xff]   ;;  %v1111_v4 = vld [vmem:[%s1510_s1 + $0x10] ss:$8 sps:$4 sm:$0xff]  }
  0x29   :  { %174 = vmatpush1.bf16.msra.mxu0 %v1108_v2  ;;  %v1112_v5 = vld [vmem:[%s1509_s0] sm:$0xff]   ;;  %v1123_v8 = vld [vmem:[#allocation2 + $0x14] ss:$8 sps:$4 sm:$0xff]   ;;  %v1113_v9 = vld [vmem:[%s1509_s0 + $0x8] sm:$0xff]   ;;  %v1383_v60 = vshrl.u32 %v78_v59, 7 }
  0x2a   :  { %175 = vmatprep.subr.bf16.mxu0 %v1109_v3  ;;  %v1120_v6 = vld [vmem:[#allocation2 + $0x4] ss:$8 sps:$4 sm:$0xff]   ;;  %v1122_v7 = vld [vmem:[#allocation2] ss:$8 sps:$4 sm:$0xff]   ;;  %v1125_v10 = vld [vmem:[#allocation2 + $0x10] ss:$8 sps:$4 sm:$0xff]  }
  0x2b   :  { %538 = vmatprep.subr.bf16.mxu1 %v1120_v6  ;;  %v1126_v11 = vld [vmem:[#allocation2 + $0x24] ss:$8 sps:$4 sm:$0xff]   ;;  %v1128_v12 = vld [vmem:[#allocation2 + $0x20] ss:$8 sps:$4 sm:$0xff]   ;;  %v1129_v13 = vld [vmem:[#allocation2 + $0x34] ss:$8 sps:$4 sm:$0xff]  }
  0x2c   :  { %539 = vmatpush1.bf16.msra.mxu1 %v1122_v7  ;;  %v1114_v14 = vld [vmem:[%s1509_s0 + $0x10] sm:$0xff]   ;;  %v1132_v16 = vld [vmem:[#allocation2 + $0x44] ss:$8 sps:$4 sm:$0xff]   ;;  %v1134_v17 = vld [vmem:[#allocation2 + $0x40] ss:$8 sps:$4 sm:$0xff]   ;;  %v80_v61 = vsub.s32 0, %v1383_v60 }
  0x2d   :  { %176 = vmatpush1.bf16.msra.mxu0 %v1111_v4  ;;  %540 = vmatprep.subr.bf16.mxu1 %v1123_v8  ;;  %v1131_v15 = vld [vmem:[#allocation2 + $0x30] ss:$8 sps:$4 sm:$0xff]   ;;  %v1135_v18 = vld [vmem:[#allocation2 + $0x54] ss:$8 sps:$4 sm:$0xff]   ;;  %v1138_v21 = vld [vmem:[#allocation2 + $0x64] ss:$8 sps:$4 sm:$0xff]  }
  0x2e   :  { %v1115_v19 = vld [vmem:[%s1509_s0 + $0x18] sm:$0xff]   ;;  %v1140_v22 = vld [vmem:[#allocation2 + $0x60] ss:$8 sps:$4 sm:$0xff]   ;;  %v1144_v26 = vld [vmem:[#allocation2 + $0x84] ss:$8 sps:$4 sm:$0xff]   ;;  %v84_v63 = vsub.s32 1, %v1383_v60 }
  0x2f   :  { %v1137_v20 = vld [vmem:[#allocation2 + $0x50] ss:$8 sps:$4 sm:$0xff]   ;;  %v1141_v23 = vld [vmem:[#allocation2 + $0x74] ss:$8 sps:$4 sm:$0xff]   ;;  %v1116_v24 = vld [vmem:[%s1509_s0 + $0x20] sm:$0xff]  }
  0x30   :  { %977 = vmatmul.mubr.msk.bf16.vlgmr.msra.gmra.mrb[0].mxu0 %vm148_vm0, %v1112_v5  ;;  %541 = vmatpush1.bf16.msra.mxu1 %v1125_v10  ;;  %v1143_v25 = vld [vmem:[#allocation2 + $0x70] ss:$8 sps:$4 sm:$0xff]   ;;  %v1146_v27 = vld [vmem:[#allocation2 + $0x80] ss:$8 sps:$4 sm:$0xff]   ;;  %v1147_v28 = vld [vmem:[#allocation2 + $0x94] ss:$8 sps:$4 sm:$0xff]  }
  0x31   :  { %215 = vmatprep.mubr.bf16.mxu0 %v1262_v0  ;;  %542 = vmatprep.subr.bf16.mxu1 %v1126_v11  ;;  %v1117_v29 = vld [vmem:[%s1509_s0 + $0x28] sm:$0xff]   ;;  %v1149_v30 = vld [vmem:[#allocation2 + $0x90] ss:$8 sps:$4 sm:$0xff]   ;;  %v1153_v33 = vld [vmem:[#allocation2 + $0xb4] ss:$8 sps:$4 sm:$0xff]  }
  0x32   :  { %v1150_v31 = vld [vmem:[#allocation2 + $0xa4] ss:$8 sps:$4 sm:$0xff]   ;;  %v1152_v32 = vld [vmem:[#allocation2 + $0xa0] ss:$8 sps:$4 sm:$0xff]   ;;  %v1118_v34 = vld [vmem:[%s1509_s0 + $0x30] sm:$0xff]  }
  0x33   :  { %v1155_v35 = vld [vmem:[#allocation2 + $0xb0] ss:$8 sps:$4 sm:$0xff]   ;;  %v1156_v36 = vld [vmem:[#allocation2 + $0xc4] ss:$8 sps:$4 sm:$0xff]   ;;  %v1158_v37 = vld [vmem:[#allocation2 + $0xc0] ss:$8 sps:$4 sm:$0xff]  }
  0x34   :  { %543 = vmatpush1.bf16.msra.mxu1 %v1128_v12  ;;  %v1159_v38 = vld [vmem:[#allocation2 + $0xd4] ss:$8 sps:$4 sm:$0xff]   ;;  %v1161_v40 = vld [vmem:[#allocation2 + $0xd0] ss:$8 sps:$4 sm:$0xff]   ;;  %v1162_v41 = vld [vmem:[#allocation2 + $0xe4] ss:$8 sps:$4 sm:$0xff]  }
  0x35   :  { %544 = vmatprep.subr.bf16.mxu1 %v1129_v13  ;;  %v1119_v39 = vld [vmem:[%s1509_s0 + $0x38] sm:$0xff]   ;;  %v1164_v42 = vld [vmem:[#allocation2 + $0xe0] ss:$8 sps:$4 sm:$0xff]   ;;  %v1172_v49 = vld [vmem:[#allocation5 + $0x50] sm:$0xff]  }
  0x36   :  { %v1165_v43 = vld [vmem:[#allocation2 + $0xf4] ss:$8 sps:$4 sm:$0xff]   ;;  %v1167_v44 = vld [vmem:[#allocation2 + $0xf0] ss:$8 sps:$4 sm:$0xff]   ;;  %v1168_v45 = vld [vmem:[#allocation5 + $0x40] sm:$0xff]  }
  0x37   :  { %v1169_v46 = vld [vmem:[#allocation5] sm:$0xff]   ;;  %v1170_v47 = vld [vmem:[#allocation5 + $0x48] sm:$0xff]   ;;  %1034 = vmatprep.subr.bf16.mxu0 %v1168_v45  ;;  %v1173_v50 = vld [vmem:[#allocation5 + $0x10] sm:$0xff]  }
  0x38   :  { %978 = vmatmul.mubr.msk.bf16.gmra.mrb[4].mxu0 %vm148_vm0, %v1113_v9  ;;  %545 = vmatpush1.bf16.msra.mxu1 %v1131_v15  ;;  %v1171_v48 = vld [vmem:[#allocation5 + $0x8] sm:$0xff]   ;;  %v1174_v51 = vld [vmem:[#allocation5 + $0x58] sm:$0xff]   ;;  %v1176_v53 = vld [vmem:[#allocation5 + $0x60] sm:$0xff]  }
  0x39   :  { %225 = vmatprep.mubr.bf16.mxu0 %v1262_v0  ;;  %546 = vmatprep.subr.bf16.mxu1 %v1132_v16  ;;  %v1175_v52 = vld [vmem:[#allocation5 + $0x18] sm:$0xff]   ;;  %v1177_v54 = vld [vmem:[#allocation5 + $0x20] sm:$0xff]   ;;  %v1178_v55 = vld [vmem:[#allocation5 + $0x68] sm:$0xff]  }
  0x3a   :  { %1035 = vmatpush3.bf16.msra.mxu0 %v1169_v46  ;;  %v1179_v56 = vld [vmem:[#allocation5 + $0x28] sm:$0xff]   ;;  %v1180_v57 = vld [vmem:[#allocation5 + $0x70] sm:$0xff]   ;;  %v76_v62 = vld [vmem:[%s1511_s2] sm:$0x3] }
  0x3b   :  { %1036 = vmatprep.subr.bf16.mxu0 %v1170_v47  ;;  %v1181_v58 = vld [vmem:[#allocation5 + $0x30] sm:$0xff]   ;;  %v1396_v1 = vrot.slane %v76_v62, %v84_v63 }
  0x3c   :  { %547 = vmatpush1.bf16.msra.mxu1 %v1134_v17 }
  0x3d   :  { %548 = vmatprep.subr.bf16.mxu1 %v1135_v18 }
  0x3e   :  { %1037 = vmatpush3.bf16.msra.mxu0 %v1171_v48 }
  0x3f   :  { %1038 = vmatprep.subr.bf16.mxu0 %v1172_v49 }
  0x40   :  { %979 = vmatmul.mubr.msk.bf16.gmra.mrb[8].mxu0 %vm148_vm0, %v1114_v14  ;;  %549 = vmatpush1.bf16.msra.mxu1 %v1137_v20 }
  0x41   :  { %235 = vmatprep.mubr.bf16.mxu0 %v1262_v0  ;;  %550 = vmatprep.subr.bf16.mxu1 %v1138_v21 }
  0x42   :  { %1039 = vmatpush3.bf16.msra.mxu0 %v1173_v50 }
  0x43   :  { %1040 = vmatprep.subr.bf16.mxu0 %v1174_v51 }
  0x44   :  { %551 = vmatpush1.bf16.msra.mxu1 %v1140_v22 }
  0x45   :  { %552 = vmatprep.subr.bf16.mxu1 %v1141_v23 }
  0x46   :  { %1041 = vmatpush3.bf16.msra.mxu0 %v1175_v52 }
  0x47   :  { %1042 = vmatprep.subr.bf16.mxu0 %v1176_v53 }
  0x48   :  { %980 = vmatmul.mubr.msk.bf16.gmra.mrb[12].mxu0 %vm148_vm0, %v1115_v19  ;;  %553 = vmatpush1.bf16.msra.mxu1 %v1143_v25 }
  0x49   :  { %245 = vmatprep.mubr.bf16.mxu0 %v1262_v0  ;;  %554 = vmatprep.subr.bf16.mxu1 %v1144_v26 }
  0x4a   :  { %1043 = vmatpush3.bf16.msra.mxu0 %v1177_v54 }
  0x4b   :  { %1044 = vmatprep.subr.bf16.mxu0 %v1178_v55 }
  0x4c   :  { %555 = vmatpush1.bf16.msra.mxu1 %v1146_v27 }
  0x4d   :  { %556 = vmatprep.subr.bf16.mxu1 %v1147_v28 }
  0x4e   :  { %1045 = vmatpush3.bf16.msra.mxu0 %v1179_v56 }
  0x4f   :  { %1046 = vmatprep.subr.bf16.mxu0 %v1180_v57 }
  0x50   :  { %981 = vmatmul.mubr.msk.bf16.gmra.mrb[16].mxu0 %vm148_vm0, %v1116_v24  ;;  %557 = vmatpush1.bf16.msra.mxu1 %v1149_v30 }
  0x51   :  { %255 = vmatprep.mubr.bf16.mxu0 %v1262_v0  ;;  %558 = vmatprep.subr.bf16.mxu1 %v1150_v31 }
  0x52   :  { %1047 = vmatpush3.bf16.msra.mxu0 %v1181_v58 }
  0x54   :  { %559 = vmatpush1.bf16.msra.mxu1 %v1152_v32 }
  0x55   :  { %560 = vmatprep.subr.bf16.mxu1 %v1153_v33 }
  0x58   :  { %982 = vmatmul.mubr.msk.bf16.gmra.mrb[20].mxu0 %vm148_vm0, %v1117_v29  ;;  %561 = vmatpush1.bf16.msra.mxu1 %v1155_v35 }
  0x59   :  { %265 = vmatprep.mubr.bf16.mxu0 %v1262_v0  ;;  %562 = vmatprep.subr.bf16.mxu1 %v1156_v36 }
  0x5c   :  { %563 = vmatpush1.bf16.msra.mxu1 %v1158_v37 }
  0x5d   :  { %564 = vmatprep.subr.bf16.mxu1 %v1159_v38 }
  0x60   :  { %983 = vmatmul.mubr.msk.bf16.gmra.mrb[24].mxu0 %vm148_vm0, %v1118_v34  ;;  %565 = vmatpush1.bf16.msra.mxu1 %v1161_v40 }
  0x61   :  { %275 = vmatprep.mubr.bf16.mxu0 %v1262_v0  ;;  %566 = vmatprep.subr.bf16.mxu1 %v1162_v41  ;;  %v1392_v0 = vrot.slane %v76_v62, %v80_v61 }
  0x64   :  { %567 = vmatpush1.bf16.msra.mxu1 %v1164_v42 }
  0x65   :  { %568 = vmatprep.subr.bf16.mxu1 %v1165_v43 }
  0x68   :  { %984 = vmatmul.mubr.msk.bf16.gmra.mrb[28].mxu0 %vm148_vm0, %v1119_v39  ;;  %569 = vmatpush1.bf16.msra.mxu1 %v1167_v44 }
 0x103   :  { %v207_v2 = vpop.f32.mrb[0].mxu0 }
 0x104   :  { %v208_v3 = vadd.f32 %v207_v2, %v1392_v0  ;;  %v209_v4 = vpop.f32.mrb[1].mxu0 }
 0x105   :  { %v210_v5 = vadd.f32 %v209_v4, %v1396_v1  ;;  %v211_v6 = vpop.f32.mrb[2].mxu0 }
 0x106   :  { %v212_v7 = vadd.f32 %v211_v6, %v1392_v0  ;;  %v213_v8 = vpop.f32.mrb[3].mxu0  ;;  %v286_v10 = vmax.f32 %v208_v3, 0.0 }
 0x107   :  { %v214_v9 = vadd.f32 %v213_v8, %v1396_v1  ;;  %v287_v12 = vmax.f32 %v210_v5, 0.0 }
 0x108   :  { %v288_v11 = vmax.f32 %v212_v7, 0.0 }
 0x109   :  { %v289_v13 = vmax.f32 %v214_v9, 0.0 }
 0x10a   :  { %v318_v14 = vpack.c.bf16 %v288_v11, %v286_v10 }
 0x10b   :  { %v217_v15 = vpop.f32.mrb[4].mxu0  ;;  %v319_v16 = vpack.c.bf16 %v289_v13, %v287_v12 }
 0x10c   :  { %v218_v17 = vadd.f32 %v217_v15, %v1392_v0  ;;  %v219_v18 = vpop.f32.mrb[5].mxu0 }
 0x10d   :  { %v220_v19 = vadd.f32 %v219_v18, %v1396_v1  ;;  %v221_v20 = vpop.f32.mrb[6].mxu0  ;;  %570 = vmatprep.mubr.bf16.mxu1 %v319_v16 }
 0x10e   :  { %v222_v21 = vadd.f32 %v221_v20, %v1392_v0  ;;  %v223_v22 = vpop.f32.mrb[7].mxu0  ;;  %571 = vmatmul.mubr.bf16.vlgmr.msra.gmra.mrb[0].mxu1 %v318_v14  ;;  %v290_v24 = vmax.f32 %v218_v17, 0.0 }
 0x10f   :  { %v224_v23 = vadd.f32 %v223_v22, %v1396_v1  ;;  %v291_v26 = vmax.f32 %v220_v19, 0.0 }
 0x110   :  { %v292_v25 = vmax.f32 %v222_v21, 0.0 }
 0x111   :  { %v293_v27 = vmax.f32 %v224_v23, 0.0 }
 0x112   :  { %v320_v28 = vpack.c.bf16 %v292_v25, %v290_v24 }
 0x113   :  { %v321_v29 = vpack.c.bf16 %v293_v27, %v291_v26  ;;  %v227_v30 = vpop.f32.mrb[8].mxu0 }
 0x114   :  { %v228_v31 = vadd.f32 %v227_v30, %v1392_v0  ;;  %v229_v32 = vpop.f32.mrb[9].mxu0 }
 0x115   :  { %v230_v33 = vadd.f32 %v229_v32, %v1396_v1  ;;  %v231_v34 = vpop.f32.mrb[10].mxu0  ;;  %580 = vmatprep.mubr.bf16.mxu1 %v321_v29 }
 0x116   :  { %v232_v35 = vadd.f32 %v231_v34, %v1392_v0  ;;  %v233_v36 = vpop.f32.mrb[11].mxu0  ;;  %581 = vmatmul.mubr.bf16.gmra.mrb[4].mxu1 %v320_v28  ;;  %v294_v38 = vmax.f32 %v228_v31, 0.0 }
 0x117   :  { %v234_v37 = vadd.f32 %v233_v36, %v1396_v1  ;;  %v295_v40 = vmax.f32 %v230_v33, 0.0 }
 0x118   :  { %v296_v39 = vmax.f32 %v232_v35, 0.0 }
 0x119   :  { %v297_v41 = vmax.f32 %v234_v37, 0.0 }
 0x11a   :  { %v322_v42 = vpack.c.bf16 %v296_v39, %v294_v38 }
 0x11b   :  { %v323_v43 = vpack.c.bf16 %v297_v41, %v295_v40  ;;  %v237_v44 = vpop.f32.mrb[12].mxu0 }
 0x11c   :  { %v238_v45 = vadd.f32 %v237_v44, %v1392_v0  ;;  %v239_v46 = vpop.f32.mrb[13].mxu0 }
 0x11d   :  { %v240_v47 = vadd.f32 %v239_v46, %v1396_v1  ;;  %v241_v48 = vpop.f32.mrb[14].mxu0  ;;  %590 = vmatprep.mubr.bf16.mxu1 %v323_v43 }
 0x11e   :  { %v242_v49 = vadd.f32 %v241_v48, %v1392_v0  ;;  %v243_v50 = vpop.f32.mrb[15].mxu0  ;;  %591 = vmatmul.mubr.bf16.gmra.mrb[8].mxu1 %v322_v42  ;;  %v298_v52 = vmax.f32 %v238_v45, 0.0 }
 0x11f   :  { %v244_v51 = vadd.f32 %v243_v50, %v1396_v1  ;;  %v299_v54 = vmax.f32 %v240_v47, 0.0 }
 0x120   :  { %v300_v53 = vmax.f32 %v242_v49, 0.0 }
 0x121   :  { %v301_v55 = vmax.f32 %v244_v51, 0.0 }
 0x122   :  { %v324_v56 = vpack.c.bf16 %v300_v53, %v298_v52 }
 0x123   :  { %v325_v57 = vpack.c.bf16 %v301_v55, %v299_v54  ;;  %v247_v58 = vpop.f32.mrb[16].mxu0  ;;  %v1182_v55 = vld [vmem:[#allocation5 + $0x78] sm:$0xff]  }
 0x124   :  { %v248_v59 = vadd.f32 %v247_v58, %v1392_v0  ;;  %v249_v62 = vpop.f32.mrb[17].mxu0  ;;  %1048 = vmatprep.subr.bf16.mxu0 %v1182_v55 }
 0x125   :  { %v250_v2 = vadd.f32 %v249_v62, %v1396_v1  ;;  %v251_v3 = vpop.f32.mrb[18].mxu0  ;;  %600 = vmatprep.mubr.bf16.mxu1 %v325_v57 }
 0x126   :  { %v252_v4 = vadd.f32 %v251_v3, %v1392_v0  ;;  %v253_v5 = vpop.f32.mrb[19].mxu0  ;;  %601 = vmatmul.mubr.bf16.gmra.mrb[12].mxu1 %v324_v56  ;;  %v302_v7 = vmax.f32 %v248_v59, 0.0  ;;  %v1183_v56 = vld [vmem:[#allocation5 + $0x38] sm:$0xff]  }
 0x127   :  { %v254_v6 = vadd.f32 %v253_v5, %v1396_v1  ;;  %v303_v9 = vmax.f32 %v250_v2, 0.0  ;;  %1049 = vmatpush3.bf16.msra.mxu0 %v1183_v56 }
 0x128   :  { %v304_v8 = vmax.f32 %v252_v4, 0.0 }
 0x129   :  { %v305_v10 = vmax.f32 %v254_v6, 0.0 }
 0x12a   :  { %v326_v11 = vpack.c.bf16 %v304_v8, %v302_v7 }
 0x12b   :  { %v327_v12 = vpack.c.bf16 %v305_v10, %v303_v9  ;;  %v257_v13 = vpop.f32.mrb[20].mxu0 }
 0x12c   :  { %v258_v14 = vadd.f32 %v257_v13, %v1392_v0  ;;  %v259_v15 = vpop.f32.mrb[21].mxu0 }
 0x12d   :  { %v260_v16 = vadd.f32 %v259_v15, %v1396_v1  ;;  %v261_v17 = vpop.f32.mrb[22].mxu0  ;;  %610 = vmatprep.mubr.bf16.mxu1 %v327_v12 }
 0x12e   :  { %v262_v18 = vadd.f32 %v261_v17, %v1392_v0  ;;  %v263_v19 = vpop.f32.mrb[23].mxu0  ;;  %611 = vmatmul.mubr.bf16.gmra.mrb[16].mxu1 %v326_v11  ;;  %v306_v21 = vmax.f32 %v258_v14, 0.0 }
 0x12f   :  { %v264_v20 = vadd.f32 %v263_v19, %v1396_v1  ;;  %v307_v23 = vmax.f32 %v260_v16, 0.0 }
 0x130   :  { %v308_v22 = vmax.f32 %v262_v18, 0.0 }
 0x131   :  { %v309_v24 = vmax.f32 %v264_v20, 0.0 }
 0x132   :  { %v328_v25 = vpack.c.bf16 %v308_v22, %v306_v21 }
 0x133   :  { %v329_v26 = vpack.c.bf16 %v309_v24, %v307_v23  ;;  %v267_v27 = vpop.f32.mrb[24].mxu0 }
 0x134   :  { %v268_v28 = vadd.f32 %v267_v27, %v1392_v0  ;;  %v269_v29 = vpop.f32.mrb[25].mxu0 }
 0x135   :  { %v270_v30 = vadd.f32 %v269_v29, %v1396_v1  ;;  %v271_v31 = vpop.f32.mrb[26].mxu0  ;;  %620 = vmatprep.mubr.bf16.mxu1 %v329_v26 }
 0x136   :  { %v272_v32 = vadd.f32 %v271_v31, %v1392_v0  ;;  %v273_v33 = vpop.f32.mrb[27].mxu0  ;;  %621 = vmatmul.mubr.bf16.gmra.mrb[20].mxu1 %v328_v25  ;;  %v310_v35 = vmax.f32 %v268_v28, 0.0 }
 0x137   :  { %v274_v34 = vadd.f32 %v273_v33, %v1396_v1  ;;  %v311_v37 = vmax.f32 %v270_v30, 0.0 }
 0x138   :  { %v312_v36 = vmax.f32 %v272_v32, 0.0 }
 0x139   :  { %v313_v38 = vmax.f32 %v274_v34, 0.0 }
 0x13a   :  { %v330_v39 = vpack.c.bf16 %v312_v36, %v310_v35 }
 0x13b   :  { %v331_v40 = vpack.c.bf16 %v313_v38, %v311_v37  ;;  %v277_v41 = vpop.f32.mrb[28].mxu0 }
 0x13c   :  { %v278_v42 = vadd.f32 %v277_v41, %v1392_v0  ;;  %v279_v43 = vpop.f32.mrb[29].mxu0 }
 0x13d   :  { %v280_v44 = vadd.f32 %v279_v43, %v1396_v1  ;;  %v281_v45 = vpop.f32.mrb[30].mxu0  ;;  %630 = vmatprep.mubr.bf16.mxu1 %v331_v40 }
 0x13e   :  { %v282_v46 = vadd.f32 %v281_v45, %v1392_v0  ;;  %v283_v47 = vpop.f32.mrb[31].mxu0  ;;  %631 = vmatmul.mubr.bf16.gmra.mrb[24].mxu1 %v330_v39  ;;  %v314_v49 = vmax.f32 %v278_v42, 0.0  ;;  %v366_v0 = vld [vmem:[%s1513_s4] sm:$0x3] }
 0x13f   :  { %v284_v48 = vadd.f32 %v283_v47, %v1396_v1  ;;  %v315_v51 = vmax.f32 %v280_v44, 0.0  ;;  %v1435_v57 = vrot.slane %v366_v0, %v80_v61  ;;  %v1439_v1 = vrot.slane %v366_v0, %v84_v63 }
 0x140   :  { %v316_v50 = vmax.f32 %v282_v46, 0.0 }
 0x141   :  { %v317_v52 = vmax.f32 %v284_v48, 0.0 }
 0x142   :  { %v332_v53 = vpack.c.bf16 %v316_v50, %v314_v49 }
 0x143   :  { %v333_v54 = vpack.c.bf16 %v317_v52, %v315_v51 }
 0x145   :  { %640 = vmatprep.mubr.bf16.mxu1 %v333_v54 }
 0x146   :  { %641 = vmatmul.mubr.bf16.gmra.mrb[28].mxu1 %v332_v53 }
 0x1e1   :  { %v572_v58 = vpop.f32.mrb[0].mxu1 }
 0x1e2   :  { %v573_v59 = vadd.f32 %v572_v58, %v1435_v57  ;;  %v574_v62 = vpop.f32.mrb[1].mxu1 }
 0x1e3   :  { %v575_v2 = vadd.f32 %v574_v62, %v1439_v1  ;;  %v576_v3 = vpop.f32.mrb[2].mxu1 }
 0x1e4   :  { %v577_v4 = vadd.f32 %v576_v3, %v1435_v57  ;;  %v578_v5 = vpop.f32.mrb[3].mxu1  ;;  %v651_v7 = vmax.f32 %v573_v59, 0.0 }
 0x1e5   :  { %v579_v6 = vadd.f32 %v578_v5, %v1439_v1  ;;  %v652_v61 = vmax.f32 %v575_v2, 0.0 }
 0x1e6   :  { %v653_v8 = vmax.f32 %v577_v4, 0.0 }
 0x1e7   :  { %v654_v9 = vmax.f32 %v579_v6, 0.0 }
 0x1e8   :  { %v683_v10 = vpack.c.bf16 %v653_v8, %v651_v7 }
 0x1e9   :  { %v684_v60 = vpack.c.bf16 %v654_v9, %v652_v61  ;;  %v582_v63 = vpop.f32.mrb[4].mxu1 }
 0x1ea   :  { %v583_v11 = vadd.f32 %v582_v63, %v1435_v57  ;;  %v584_v12 = vpop.f32.mrb[5].mxu1 }
 0x1eb   :  { %v585_v13 = vadd.f32 %v584_v12, %v1439_v1  ;;  %v586_v14 = vpop.f32.mrb[6].mxu1  ;;  %866 = vmatprep.mubr.bf16.mxu0 %v684_v60 }
 0x1ec   :  { %v587_v15 = vadd.f32 %v586_v14, %v1435_v57  ;;  %v588_v16 = vpop.f32.mrb[7].mxu1  ;;  %867 = vmatmul.mubr.bf16.vlgmr.msra.gmra.mrb[32].mxu0 %v683_v10  ;;  %v655_v18 = vmax.f32 %v583_v11, 0.0 }
 0x1ed   :  { %v589_v17 = vadd.f32 %v588_v16, %v1439_v1  ;;  %v656_v20 = vmax.f32 %v585_v13, 0.0 }
 0x1ee   :  { %v657_v19 = vmax.f32 %v587_v15, 0.0 }
 0x1ef   :  { %v658_v21 = vmax.f32 %v589_v17, 0.0 }
 0x1f0   :  { %v685_v22 = vpack.c.bf16 %v657_v19, %v655_v18 }
 0x1f1   :  { %v686_v23 = vpack.c.bf16 %v658_v21, %v656_v20  ;;  %v592_v24 = vpop.f32.mrb[8].mxu1 }
 0x1f2   :  { %v593_v25 = vadd.f32 %v592_v24, %v1435_v57  ;;  %v594_v26 = vpop.f32.mrb[9].mxu1 }
 0x1f3   :  { %v595_v27 = vadd.f32 %v594_v26, %v1439_v1  ;;  %v596_v28 = vpop.f32.mrb[10].mxu1  ;;  %874 = vmatprep.mubr.bf16.mxu0 %v686_v23 }
 0x1f4   :  { %v597_v29 = vadd.f32 %v596_v28, %v1435_v57  ;;  %v598_v30 = vpop.f32.mrb[11].mxu1  ;;  %875 = vmatmul.mubr.bf16.gmra.mrb[36].mxu0 %v685_v22  ;;  %v659_v32 = vmax.f32 %v593_v25, 0.0 }
 0x1f5   :  { %v599_v31 = vadd.f32 %v598_v30, %v1439_v1  ;;  %v660_v34 = vmax.f32 %v595_v27, 0.0 }
 0x1f6   :  { %v661_v33 = vmax.f32 %v597_v29, 0.0 }
 0x1f7   :  { %v662_v35 = vmax.f32 %v599_v31, 0.0 }
 0x1f8   :  { %v687_v36 = vpack.c.bf16 %v661_v33, %v659_v32 }
 0x1f9   :  { %v688_v37 = vpack.c.bf16 %v662_v35, %v660_v34  ;;  %v602_v38 = vpop.f32.mrb[12].mxu1 }
 0x1fa   :  { %v603_v39 = vadd.f32 %v602_v38, %v1435_v57  ;;  %v604_v40 = vpop.f32.mrb[13].mxu1 }
 0x1fb   :  { %v605_v41 = vadd.f32 %v604_v40, %v1439_v1  ;;  %v606_v42 = vpop.f32.mrb[14].mxu1  ;;  %882 = vmatprep.mubr.bf16.mxu0 %v688_v37 }
 0x1fc   :  { %v607_v43 = vadd.f32 %v606_v42, %v1435_v57  ;;  %v608_v44 = vpop.f32.mrb[15].mxu1  ;;  %883 = vmatmul.mubr.bf16.gmra.mrb[40].mxu0 %v687_v36  ;;  %v663_v46 = vmax.f32 %v603_v39, 0.0 }
 0x1fd   :  { %v609_v45 = vadd.f32 %v608_v44, %v1439_v1  ;;  %v664_v48 = vmax.f32 %v605_v41, 0.0 }
 0x1fe   :  { %v665_v47 = vmax.f32 %v607_v43, 0.0 }
 0x1ff   :  { %v666_v49 = vmax.f32 %v609_v45, 0.0 }
 0x200   :  { %v689_v50 = vpack.c.bf16 %v665_v47, %v663_v46  ;;  %v1476_v47 = vld [vmem:[%s1515_s6] ss:$0 sm:$0xff]  ;;  %s1263_s6 = smov [#allocation7]  }
 0x201   :  { %v690_v51 = vpack.c.bf16 %v666_v49, %v664_v48  ;;  %v612_v52 = vpop.f32.mrb[16].mxu1  ;;  %s952_s8 = sshll.u32 %s1263_s6, 4  ;;  %s953_s8 = int_to_ptr.vmem [resolvable:$true] %s952_s8 }
 0x202   :  { %v613_v53 = vadd.f32 %v612_v52, %v1435_v57  ;;  %v614_v54 = vpop.f32.mrb[17].mxu1  ;;  %s1228_s9 = scalar_lea.vmem %s953_s8, 2048  ;;  %p1233_p3 = scmp.lt.s32.totalorder %s953_s8, %s953_s8 }
 0x203   :  { %v615_v55 = vadd.f32 %v614_v54, %v1439_v1  ;;  %v616_v56 = vpop.f32.mrb[18].mxu1  ;;  %890 = vmatprep.mubr.bf16.mxu0 %v690_v51  ;;  %p1229_p2 = scmp.ne.s32.totalorder %s953_s8, %s1228_s9  ;;  %p1234_p4 = scmp.lt.s32.totalorder %s1228_s9, %s1228_s9 }
 0x204   :  { %v617_v0 = vadd.f32 %v616_v56, %v1435_v57  ;;  %v618_v58 = vpop.f32.mrb[19].mxu1  ;;  %891 = vmatmul.mubr.bf16.gmra.mrb[44].mxu0 %v689_v50  ;;  %v667_v62 = vmax.f32 %v613_v53, 0.0 }
 0x205   :  { %v619_v59 = vadd.f32 %v618_v58, %v1439_v1  ;;  %v668_v3 = vmax.f32 %v615_v55, 0.0  ;;  %p1235_p5 = por %p1234_p4, %p1233_p3 }
 0x206   :  { %v669_v2 = vmax.f32 %v617_v0, 0.0 }
 0x207   :  { %v670_v4 = vmax.f32 %v619_v59, 0.0  ;;  %p1236_p6 = pnand %p1235_p5, %p1229_p2 }
 0x208   :  { %v691_v5 = vpack.c.bf16 %v669_v2, %v667_v62 }
 0x209   :  { %v692_v6 = vpack.c.bf16 %v670_v4, %v668_v3  ;;  %v622_v7 = vpop.f32.mrb[20].mxu1 }
 0x20a   :  { %v623_v8 = vadd.f32 %v622_v7, %v1435_v57  ;;  %v624_v61 = vpop.f32.mrb[21].mxu1 }
 0x20b   :  { %v625_v9 = vadd.f32 %v624_v61, %v1439_v1  ;;  %v626_v10 = vpop.f32.mrb[22].mxu1  ;;  %898 = vmatprep.mubr.bf16.mxu0 %v692_v6 }
 0x20c   :  { %v627_v60 = vadd.f32 %v626_v10, %v1435_v57  ;;  %v628_v63 = vpop.f32.mrb[23].mxu1  ;;  %899 = vmatmul.mubr.bf16.gmra.mrb[48].mxu0 %v691_v5  ;;  %v671_v12 = vmax.f32 %v623_v8, 0.0 }
 0x20d   :  { %v629_v11 = vadd.f32 %v628_v63, %v1439_v1  ;;  %v672_v14 = vmax.f32 %v625_v9, 0.0 }
 0x20e   :  { %v673_v13 = vmax.f32 %v627_v60, 0.0 }
 0x20f   :  { %v674_v15 = vmax.f32 %v629_v11, 0.0 }
 0x210   :  { %v693_v16 = vpack.c.bf16 %v673_v13, %v671_v12 }
 0x211   :  { %v694_v17 = vpack.c.bf16 %v674_v15, %v672_v14  ;;  %v632_v18 = vpop.f32.mrb[24].mxu1 }
 0x212   :  { %v633_v19 = vadd.f32 %v632_v18, %v1435_v57  ;;  %v634_v20 = vpop.f32.mrb[25].mxu1 }
 0x213   :  { %v635_v21 = vadd.f32 %v634_v20, %v1439_v1  ;;  %v636_v22 = vpop.f32.mrb[26].mxu1  ;;  %906 = vmatprep.mubr.bf16.mxu0 %v694_v17 }
 0x214   :  { %v637_v23 = vadd.f32 %v636_v22, %v1435_v57  ;;  %v638_v24 = vpop.f32.mrb[27].mxu1  ;;  %907 = vmatmul.mubr.bf16.gmra.mrb[52].mxu0 %v693_v16  ;;  %v675_v26 = vmax.f32 %v633_v19, 0.0 }
 0x215   :  { %v639_v25 = vadd.f32 %v638_v24, %v1439_v1  ;;  %v676_v28 = vmax.f32 %v635_v21, 0.0 }
 0x216   :  { %v677_v27 = vmax.f32 %v637_v23, 0.0 }
 0x217   :  { %v678_v29 = vmax.f32 %v639_v25, 0.0 }
 0x218   :  { %v695_v30 = vpack.c.bf16 %v677_v27, %v675_v26 }
 0x219   :  { %v696_v31 = vpack.c.bf16 %v678_v29, %v676_v28  ;;  %v642_v32 = vpop.f32.mrb[28].mxu1 }
 0x21a   :  { %v643_v33 = vadd.f32 %v642_v32, %v1435_v57  ;;  %v644_v34 = vpop.f32.mrb[29].mxu1 }
 0x21b   :  { %v645_v35 = vadd.f32 %v644_v34, %v1439_v1  ;;  %v646_v36 = vpop.f32.mrb[30].mxu1  ;;  %914 = vmatprep.mubr.bf16.mxu0 %v696_v31 }
 0x21c   :  { %v647_v37 = vadd.f32 %v646_v36, %v1435_v57  ;;  %v648_v38 = vpop.f32.mrb[31].mxu1  ;;  %915 = vmatmul.mubr.bf16.gmra.mrb[56].mxu0 %v695_v30  ;;  %v679_v40 = vmax.f32 %v643_v33, 0.0 }
 0x21d   :  { %v649_v39 = vadd.f32 %v648_v38, %v1439_v1  ;;  %v680_v42 = vmax.f32 %v645_v35, 0.0 }
 0x21e   :  { %v681_v41 = vmax.f32 %v647_v37, 0.0 }
 0x21f   :  { %v682_v43 = vmax.f32 %v649_v39, 0.0 }
 0x220   :  { %v697_v44 = vpack.c.bf16 %v681_v41, %v679_v40 }
 0x221   :  { %v698_v45 = vpack.c.bf16 %v682_v43, %v680_v42 }
 0x223   :  { %922 = vmatprep.mubr.bf16.mxu0 %v698_v45 }
 0x224   :  { %923 = vmatmul.mubr.bf16.gmra.mrb[60].mxu0 %v697_v44 }
 0x2bf   :  { %v1050_v46 = vpop.f32.mrb[32].mxu0 }
 0x2c0   :  { %v1051_v48 = vpop.f32.mrb[33].mxu0 }
 0x2c1   :  { %v1052_v57 = vadd.f32 %v1051_v48, %v1050_v46  ;;  %v1053_v49 = vpop.f32.mrb[34].mxu0 }
 0x2c2   :  { %v1054_v50 = vpop.f32.mrb[35].mxu0 }
 0x2c3   :  { %v869_v1 = vadd.f32 %v1052_v57, %v1476_v47  ;;  %v1055_v51 = vadd.f32 %v1054_v50, %v1053_v49 }
 0x2c5   :  { %931 = vst [vmem:[#allocation7] sm:$0xff] %v869_v1  ;;  %v872_v52 = vadd.f32 %v1055_v51, %v1476_v47 }
 0x2c7   :  { %932 = vst [vmem:[#allocation7 + $0x8] sm:$0xff] %v872_v52  ;;  %v1056_v53 = vpop.f32.mrb[36].mxu0 }
 0x2c8   :  { %v1057_v54 = vpop.f32.mrb[37].mxu0 }
 0x2c9   :  { %v1058_v55 = vadd.f32 %v1057_v54, %v1056_v53  ;;  %v1059_v56 = vpop.f32.mrb[38].mxu0 }
 0x2ca   :  { %v1060_v0 = vpop.f32.mrb[39].mxu0 }
 0x2cb   :  { %v877_v58 = vadd.f32 %v1058_v55, %v1476_v47  ;;  %v1061_v59 = vadd.f32 %v1060_v0, %v1059_v56 }
 0x2cd   :  { %933 = vst [vmem:[#allocation7 + $0x10] sm:$0xff] %v877_v58  ;;  %v880_v62 = vadd.f32 %v1061_v59, %v1476_v47 }
 0x2cf   :  { %934 = vst [vmem:[#allocation7 + $0x18] sm:$0xff] %v880_v62  ;;  %v1062_v2 = vpop.f32.mrb[40].mxu0 }
 0x2d0   :  { %v1063_v3 = vpop.f32.mrb[41].mxu0 }
 0x2d1   :  { %v1064_v4 = vadd.f32 %v1063_v3, %v1062_v2  ;;  %v1065_v5 = vpop.f32.mrb[42].mxu0 }
 0x2d2   :  { %v1066_v6 = vpop.f32.mrb[43].mxu0 }
 0x2d3   :  { %v885_v7 = vadd.f32 %v1064_v4, %v1476_v47  ;;  %v1067_v8 = vadd.f32 %v1066_v6, %v1065_v5 }
 0x2d5   :  { %935 = vst [vmem:[#allocation7 + $0x20] sm:$0xff] %v885_v7  ;;  %v888_v61 = vadd.f32 %v1067_v8, %v1476_v47 }
 0x2d7   :  { %936 = vst [vmem:[#allocation7 + $0x28] sm:$0xff] %v888_v61  ;;  %v1068_v9 = vpop.f32.mrb[44].mxu0 }
 0x2d8   :  { %v1069_v10 = vpop.f32.mrb[45].mxu0 }
 0x2d9   :  { %v1070_v60 = vadd.f32 %v1069_v10, %v1068_v9  ;;  %v1071_v63 = vpop.f32.mrb[46].mxu0 }
 0x2da   :  { %v1072_v11 = vpop.f32.mrb[47].mxu0 }
 0x2db   :  { %v893_v12 = vadd.f32 %v1070_v60, %v1476_v47  ;;  %v1073_v13 = vadd.f32 %v1072_v11, %v1071_v63 }
 0x2dd   :  { %937 = vst [vmem:[#allocation7 + $0x30] sm:$0xff] %v893_v12  ;;  %v896_v14 = vadd.f32 %v1073_v13, %v1476_v47 }
 0x2df   :  { %938 = vst [vmem:[#allocation7 + $0x38] sm:$0xff] %v896_v14  ;;  %v1074_v15 = vpop.f32.mrb[48].mxu0 }
 0x2e0   :  { %v1075_v16 = vpop.f32.mrb[49].mxu0 }
 0x2e1   :  { %v1076_v17 = vadd.f32 %v1075_v16, %v1074_v15  ;;  %v1077_v18 = vpop.f32.mrb[50].mxu0 }
 0x2e2   :  { %v1078_v19 = vpop.f32.mrb[51].mxu0 }
 0x2e3   :  { %v901_v20 = vadd.f32 %v1076_v17, %v1476_v47  ;;  %v1079_v21 = vadd.f32 %v1078_v19, %v1077_v18 }
 0x2e5   :  { %939 = vst [vmem:[#allocation7 + $0x40] sm:$0xff] %v901_v20  ;;  %v904_v22 = vadd.f32 %v1079_v21, %v1476_v47 }
 0x2e7   :  { %940 = vst [vmem:[#allocation7 + $0x48] sm:$0xff] %v904_v22  ;;  %v1080_v23 = vpop.f32.mrb[52].mxu0 }
 0x2e8   :  { %v1081_v24 = vpop.f32.mrb[53].mxu0 }
 0x2e9   :  { %v1082_v25 = vadd.f32 %v1081_v24, %v1080_v23  ;;  %v1083_v26 = vpop.f32.mrb[54].mxu0 }
 0x2ea   :  { %v1084_v27 = vpop.f32.mrb[55].mxu0 }
 0x2eb   :  { %v909_v28 = vadd.f32 %v1082_v25, %v1476_v47  ;;  %v1085_v29 = vadd.f32 %v1084_v27, %v1083_v26 }
 0x2ed   :  { %941 = vst [vmem:[#allocation7 + $0x50] sm:$0xff] %v909_v28  ;;  %v912_v30 = vadd.f32 %v1085_v29, %v1476_v47 }
 0x2ef   :  { %942 = vst [vmem:[#allocation7 + $0x58] sm:$0xff] %v912_v30  ;;  %v1086_v31 = vpop.f32.mrb[56].mxu0 }
 0x2f0   :  { %v1087_v32 = vpop.f32.mrb[57].mxu0 }
 0x2f1   :  { %v1088_v33 = vadd.f32 %v1087_v32, %v1086_v31  ;;  %v1089_v34 = vpop.f32.mrb[58].mxu0 }
 0x2f2   :  { %v1090_v35 = vpop.f32.mrb[59].mxu0 }
 0x2f3   :  { %v917_v36 = vadd.f32 %v1088_v33, %v1476_v47  ;;  %v1091_v37 = vadd.f32 %v1090_v35, %v1089_v34 }
 0x2f5   :  { %943 = vst [vmem:[#allocation7 + $0x60] sm:$0xff] %v917_v36  ;;  %v920_v38 = vadd.f32 %v1091_v37, %v1476_v47 }
 0x2f7   :  { %944 = vst [vmem:[#allocation7 + $0x68] sm:$0xff] %v920_v38  ;;  %v1092_v39 = vpop.f32.mrb[60].mxu0 }
 0x2f8   :  { %v1093_v40 = vpop.f32.mrb[61].mxu0 }
 0x2f9   :  { %v1094_v41 = vadd.f32 %v1093_v40, %v1092_v39  ;;  %v1095_v42 = vpop.f32.mrb[62].mxu0 }
 0x2fa   :  { %v1096_v43 = vpop.f32.mrb[63].mxu0 }
 0x2fb   :  { %v925_v44 = vadd.f32 %v1094_v41, %v1476_v47  ;;  %v1097_v45 = vadd.f32 %v1096_v43, %v1095_v42 }
 0x2fd   :  { %945 = vst [vmem:[#allocation7 + $0x70] sm:$0xff] %v925_v44  ;;  %v928_v46 = vadd.f32 %v1097_v45, %v1476_v47 }
 0x2ff   :  { %946 = vst [vmem:[#allocation7 + $0x78] sm:$0xff] %v928_v46 }
 0x300   :  { %1239 = shalt.err (!%p1236_p6)
}
 0x301   :  { %s1240_s13 = scalar_lea.hbm %s1516_s7, 2048 }
 0x302   :  { %p1241_p7 = scmp.ne.s32.totalorder %s1516_s7, %s1240_s13  ;;  %p1244_p8 = scmp.lt.u32.totalorder %s1240_s13, %s1516_s7 }
 0x304   :  { %p1246_p9 = pnand %p1244_p8, %p1241_p7 }
 0x306   :  { %1249 = shalt.err (!%p1246_p9)
}
 0x307   :  { %958 = dma.vmem_to_hbm [thread:$0]  %s953_s8, 2048, %s1516_s7, [#allocation4], %s1257_s11, %s1257_s11, %s1258_s12  }
 0x308   :  { %1254 = dma.done.wait [#allocation4], 2048  }
 0x309   :  { %1255 = vsyncadd [#allocation4], 4294965248 }
 0x30a   :  { %962 = vsyncpa [#allocation3], 1 }
 0x30b   :  { %963 = vsyncpa [#allocation6], 1 }
 0x30c   :  { %964 = vsyncpa [#allocation4], 1 }

</bundles_post_ra>
